<compile_context>
chip_gen: v7x
topology: tpu7x:2x2x1
jax: 0.10.0
libtpu: 0.0.40
codegen_flags: <defaults>
</compile_context>

<pallas_src>
import functools

import jax
import jax.numpy as jnp
from jax.experimental import pallas as pl
from jax.experimental.pallas import tpu as pltpu


# ---------------------------------------------------------------------------
# Fused single-kernel path (small C*HW)
# ---------------------------------------------------------------------------
def _fused_kernel(x_ref, w1m_ref, w1s_ref, w2_ref, lamb_ref, o_ref):
    # x_ref: (1, C, HW)  w1m/w1s: (C, hid)  w2: (hid, C)  lamb: (1,1) SMEM
    hw = x_ref.shape[-1]
    xf = x_ref[...].astype(jnp.float32)                   # (1, C, HW)

    # one-pass statistics: sum and sum of squares
    s = jnp.sum(xf, axis=-1)                              # (1, C)
    sq = jnp.sum(xf * xf, axis=-1)                        # (1, C)
    mean = s * (1.0 / hw)
    denom = float(max(hw - 1, 1))                         # guard HW == 1
    var = jnp.maximum((sq - hw * mean * mean) / denom, 0.0)
    std = jnp.sqrt(var)                                   # unbiased, as torch.std

    # cat(mean, std) @ W1 == mean @ W1[:C] + std @ W1[C:]  (no lane concat)
    h = jnp.maximum(
        jnp.dot(mean, w1m_ref[...], preferred_element_type=jnp.float32)
        + jnp.dot(std, w1s_ref[...], preferred_element_type=jnp.float32),
        0.0)
    attn = jax.nn.sigmoid(
        jnp.dot(h, w2_ref[...], preferred_element_type=jnp.float32))
    scale = lamb_ref[0, 0] * attn                         # fold lamb once

    # Re-read x in its native dtype for the final scale so the f32 copy does
    # not have to stay live across the MLP.
    x = x_ref[...]
    o_ref[...] = (x * scale[..., None].astype(x.dtype)).astype(o_ref.dtype)


# ---------------------------------------------------------------------------
# Two-phase tiled path (large C*HW)
# ---------------------------------------------------------------------------
def _stats_kernel(x_ref, sum_ref, sumsq_ref):
    # x_ref: (1, C, T); sum/sumsq: (1, C, 1) f32, resident across the HW axis.
    @pl.when(pl.program_id(1) == 0)
    def _():
        sum_ref[...] = jnp.zeros_like(sum_ref)
        sumsq_ref[...] = jnp.zeros_like(sumsq_ref)

    xf = x_ref[...].astype(jnp.float32)
    sum_ref[...] += jnp.sum(xf, axis=-1, keepdims=True)
    sumsq_ref[...] += jnp.sum(xf * xf, axis=-1, keepdims=True)


def _attn_kernel(sum_ref, sumsq_ref, w1m_ref, w1s_ref, w2_ref, lamb_ref,
                 scale_ref, *, hw):
    # All batches processed at once -> the MLP LHS has B rows, not 1.
    s = sum_ref[...]                                      # (B, C) f32
    sq = sumsq_ref[...]                                   # (B, C) f32
    mean = s * (1.0 / hw)
    denom = float(max(hw - 1, 1))                         # guard HW == 1
    var = jnp.maximum((sq - hw * mean * mean) / denom, 0.0)
    std = jnp.sqrt(var)
    h = jnp.maximum(
        jnp.dot(mean, w1m_ref[...], preferred_element_type=jnp.float32)
        + jnp.dot(std, w1s_ref[...], preferred_element_type=jnp.float32),
        0.0)
    attn = jax.nn.sigmoid(
        jnp.dot(h, w2_ref[...], preferred_element_type=jnp.float32))
    scale_ref[...] = lamb_ref[0, 0] * attn                # (B, C)


def _scale_kernel(scale_ref, x_ref, o_ref):
    # scale_ref: (1, C, 1); x_ref/o_ref: (1, C, T) lane-dense tiles.
    x = x_ref[...]
    o_ref[...] = (x * scale_ref[...].astype(x.dtype)).astype(o_ref.dtype)


# ---------------------------------------------------------------------------
# Wrapper
# ---------------------------------------------------------------------------
_FUSED_BYTES_LIMIT = 1 << 20   # per-image (C*HW) block threshold for fusing


def _pick_hw_tile(hw, c, itemsize):
    """Largest multiple-of-128 divisor of hw whose (C, T) tile is ~<= 1 MiB."""
    if hw % 128 != 0:
        return hw                          # full row is always a legal block
    cap = max(128, ((1 << 20) // max(1, c * itemsize)) // 128 * 128)
    t = min(hw, cap)
    while t > 128 and hw % t != 0:
        t -= 128
    return t if (t >= 128 and hw % t == 0) else hw


def channel_attn(x, w1, w2, lamb):
    """x: (B, C, H, W) NCHW.  w1: (2C, C//8), w2: (C//8, C), lamb: (1, 1)."""
    B, C, H, W = x.shape
    HW = H * W
    hid = w1.shape[1]
    x3 = x.reshape(B, C, HW)
    w1m, w1s = w1[:C], w1[C:]              # split once, outside the kernel

    # ---- small feature maps: single fused kernel, one image per grid step
    if C * HW * x.dtype.itemsize <= _FUSED_BYTES_LIMIT:
        out3 = pl.pallas_call(
            _fused_kernel,
            out_shape=jax.ShapeDtypeStruct((B, C, HW), x.dtype),
            grid_spec=pltpu.PrefetchScalarGridSpec(
                num_scalar_prefetch=0,
                grid=(B,),
                in_specs=[
                    pl.BlockSpec((1, C, HW), lambda b: (b, 0, 0)),
                    pl.BlockSpec((C, hid), lambda b: (0, 0)),
                    pl.BlockSpec((C, hid), lambda b: (0, 0)),
                    pl.BlockSpec((hid, C), lambda b: (0, 0)),
                    pl.BlockSpec(memory_space=pltpu.MemorySpace.SMEM),
                ],
                out_specs=pl.BlockSpec((1, C, HW), lambda b: (b, 0, 0)),
            ),
            compiler_params=pltpu.CompilerParams(
                dimension_semantics=("parallel",)),
        )(x3, w1m, w1s, w2, lamb)
        return out3.reshape(B, C, H, W)

    # ---- large feature maps: reduce -> batched MLP -> scale
    T = _pick_hw_tile(HW, C, x.dtype.itemsize)
    n_t = HW // T

    # Phase 1: per-channel sum / sum-of-squares, HW tiled (reduction axis last).
    sums, sumsqs = pl.pallas_call(
        _stats_kernel,
        out_shape=(jax.ShapeDtypeStruct((B, C, 1), jnp.float32),
                   jax.ShapeDtypeStruct((B, C, 1), jnp.float32)),
        grid_spec=pltpu.PrefetchScalarGridSpec(
            num_scalar_prefetch=0,
            grid=(B, n_t),
            in_specs=[pl.BlockSpec((1, C, T), lambda b, t: (b, 0, t))],
            out_specs=(pl.BlockSpec((1, C, 1), lambda b, t: (b, 0, 0)),
                       pl.BlockSpec((1, C, 1), lambda b, t: (b, 0, 0))),
        ),
        compiler_params=pltpu.CompilerParams(
            dimension_semantics=("parallel", "arbitrary")),
    )(x3)

    # Tiny SE MLP for all B rows at once (single invocation, no grid).
    scale = pl.pallas_call(
        functools.partial(_attn_kernel, hw=HW),
        out_shape=jax.ShapeDtypeStruct((B, C), jnp.float32),
        in_specs=[
            pl.BlockSpec(memory_space=pltpu.MemorySpace.VMEM),
            pl.BlockSpec(memory_space=pltpu.MemorySpace.VMEM),
            pl.BlockSpec(memory_space=pltpu.MemorySpace.VMEM),
            pl.BlockSpec(memory_space=pltpu.MemorySpace.VMEM),
            pl.BlockSpec(memory_space=pltpu.MemorySpace.VMEM),
            pl.BlockSpec(memory_space=pltpu.MemorySpace.SMEM),
        ],
        out_specs=pl.BlockSpec(memory_space=pltpu.MemorySpace.VMEM),
    )(sums.reshape(B, C), sumsqs.reshape(B, C), w1m, w1s, w2, lamb)

    # Phase 2: lane-dense elementwise scale over the same HW tiling.
    out3 = pl.pallas_call(
        _scale_kernel,
        out_shape=jax.ShapeDtypeStruct((B, C, HW), x.dtype),
        grid_spec=pltpu.PrefetchScalarGridSpec(
            num_scalar_prefetch=0,
            grid=(B, n_t),
            in_specs=[
                pl.BlockSpec((1, C, 1), lambda b, t: (b, 0, 0)),
                pl.BlockSpec((1, C, T), lambda b, t: (b, 0, t)),
            ],
            out_specs=pl.BlockSpec((1, C, T), lambda b, t: (b, 0, t)),
        ),
        compiler_params=pltpu.CompilerParams(
            dimension_semantics=("parallel", "parallel")),
    )(scale.reshape(B, C, 1), x3)
    return out3.reshape(B, C, H, W)


def channel_attn_ref(x, w1, w2, lamb):
    """Pure-JAX reference matching the PyTorch forward."""
    B, C, H, W = x.shape
    new = x.reshape(B, C, -1)
    mean = jnp.mean(new, axis=-1)
    std = jnp.std(new, axis=-1, ddof=1)                   # torch.std: unbiased
    feat = jnp.concatenate([mean, std], axis=1)           # (B, 2C)
    h = jnp.maximum(feat @ w1, 0.0)
    attn = jax.nn.sigmoid(h @ w2)                         # (B, C)
    return lamb[0, 0] * attn[:, :, None, None] * x


if __name__ == "__main__":
    channel_attn_jit = jax.jit(channel_attn)

    key = jax.random.PRNGKey(0)
    kx, kw1, kw2, kx2 = jax.random.split(key, 4)

    # Small config consistent with the module: in_dim=32, reduction=8 -> hid=4.
    B, C, H, W = 2, 32, 16, 16
    hid = C // 8
    x = jax.random.normal(kx, (B, C, H, W), dtype=jnp.float32)
    w1 = jax.random.normal(kw1, (2 * C, hid), dtype=jnp.float32) * 0.1
    w2 = jax.random.normal(kw2, (hid, C), dtype=jnp.float32) * 0.1
    lamb = jnp.ones((1, 1), dtype=jnp.float32)            # nn.Parameter(torch.ones(1))

    out = jax.block_until_ready(channel_attn_jit(x, w1, w2, lamb))
    ref = channel_attn_ref(x, w1, w2, lamb)
    assert out.shape == x.shape
    assert jnp.allclose(out, ref, atol=1e-4, rtol=1e-4), "fused path mismatch"

    # Larger spatial map exercises the two-phase tiled path (multi-tile HW).
    H2 = W2 = 128
    x_big = jax.random.normal(kx2, (B, C, H2, W2), dtype=jnp.float32)
    out_big = jax.block_until_ready(channel_attn_jit(x_big, w1, w2, lamb))
    ref_big = channel_attn_ref(x_big, w1, w2, lamb)
    assert out_big.shape == x_big.shape
    assert jnp.allclose(out_big, ref_big, atol=1e-4, rtol=1e-4), "tiled path mismatch"

    print("KERNEL_OK")
</pallas_src>

<mosaic_0001>
module attributes {stable_mosaic.version = 11 : i64} {
  func.func @_fused_kernel(%arg0: i32, %arg1: memref<1x32x256xf32, #tpu.memory_space<vmem>>, %arg2: memref<32x4xf32, #tpu.memory_space<vmem>>, %arg3: memref<32x4xf32, #tpu.memory_space<vmem>>, %arg4: memref<4x32xf32, #tpu.memory_space<vmem>>, %arg5: memref<1x1xf32, #tpu.memory_space<smem>>, %arg6: memref<1x32x256xf32, #tpu.memory_space<vmem>>) attributes {dimension_semantics = [#tpu.dimension_semantics<parallel>], iteration_bounds = array<i64: 2>, scalar_prefetch = 0 : i64, scratch_operands = 0 : i64, tpu.core_type = #tpu.core_type<tc>, window_params = [{transform_indices = @transform_0, window_bounds = array<i64: 1, 32, 256>}, {pipeline_mode = #tpu.pipeline_mode<synchronous>, transform_indices = @transform_1, window_bounds = array<i64: 32, 4>}, {pipeline_mode = #tpu.pipeline_mode<synchronous>, transform_indices = @transform_2, window_bounds = array<i64: 32, 4>}, {pipeline_mode = #tpu.pipeline_mode<synchronous>, transform_indices = @transform_3, window_bounds = array<i64: 4, 32>}, {transform_indices = @transform_4, window_bounds = array<i64: 1, 1>}, {transform_indices = @transform_5, window_bounds = array<i64: 1, 32, 256>}]} {
    %c0 = arith.constant 0 : index
    %c0_0 = arith.constant 0 : index
    %c0_1 = arith.constant 0 : index
    %0 = vector.load %arg1[%c0, %c0_0, %c0_1] : memref<1x32x256xf32, #tpu.memory_space<vmem>>, vector<1x32x256xf32>
    %cst = arith.constant dense<0.000000e+00> : vector<1x32xf32>
    %1 = vector.multi_reduction <add>, %0, %cst [2] : vector<1x32x256xf32> to vector<1x32xf32>
    %2 = arith.mulf %0, %0 : vector<1x32x256xf32>
    %cst_2 = arith.constant dense<0.000000e+00> : vector<1x32xf32>
    %3 = vector.multi_reduction <add>, %2, %cst_2 [2] : vector<1x32x256xf32> to vector<1x32xf32>
    %cst_3 = arith.constant 3.906250e-03 : f32
    %4 = vector.broadcast %cst_3 : f32 to vector<1x32xf32>
    %5 = arith.mulf %1, %4 : vector<1x32xf32>
    %cst_4 = arith.constant 2.560000e+02 : f32
    %6 = vector.broadcast %cst_4 : f32 to vector<1x32xf32>
    %7 = arith.mulf %6, %5 : vector<1x32xf32>
    %8 = arith.mulf %7, %5 : vector<1x32xf32>
    %9 = arith.subf %3, %8 : vector<1x32xf32>
    %cst_5 = arith.constant 2.550000e+02 : f32
    %10 = vector.broadcast %cst_5 : f32 to vector<1x32xf32>
    %11 = arith.divf %9, %10 : vector<1x32xf32>
    %cst_6 = arith.constant 0.000000e+00 : f32
    %12 = vector.broadcast %cst_6 : f32 to vector<1x32xf32>
    %13 = arith.maximumf %11, %12 : vector<1x32xf32>
    %14 = math.sqrt %13 : vector<1x32xf32>
    %c0_7 = arith.constant 0 : index
    %c0_8 = arith.constant 0 : index
    %15 = vector.load %arg2[%c0_7, %c0_8] : memref<32x4xf32, #tpu.memory_space<vmem>>, vector<32x4xf32>
    %cst_9 = arith.constant dense<0.000000e+00> : vector<1x4xf32>
    %16 = tpu.matmul %5, %15, %cst_9 {dimension_numbers = #tpu.dot_dimension_numbers<[1], [0], [0], [1], [0, 0, 1, 1], [], []>} : vector<1x32xf32>, vector<32x4xf32>, vector<1x4xf32> -> vector<1x4xf32>
    %c0_10 = arith.constant 0 : index
    %c0_11 = arith.constant 0 : index
    %17 = vector.load %arg3[%c0_10, %c0_11] : memref<32x4xf32, #tpu.memory_space<vmem>>, vector<32x4xf32>
    %cst_12 = arith.constant dense<0.000000e+00> : vector<1x4xf32>
    %18 = tpu.matmul %14, %17, %cst_12 {dimension_numbers = #tpu.dot_dimension_numbers<[1], [0], [0], [1], [0, 0, 1, 1], [], []>} : vector<1x32xf32>, vector<32x4xf32>, vector<1x4xf32> -> vector<1x4xf32>
    %19 = arith.addf %16, %18 : vector<1x4xf32>
    %cst_13 = arith.constant 0.000000e+00 : f32
    %20 = vector.broadcast %cst_13 : f32 to vector<1x4xf32>
    %21 = arith.maximumf %19, %20 : vector<1x4xf32>
    %c0_14 = arith.constant 0 : index
    %c0_15 = arith.constant 0 : index
    %22 = vector.load %arg4[%c0_14, %c0_15] : memref<4x32xf32, #tpu.memory_space<vmem>>, vector<4x32xf32>
    %cst_16 = arith.constant dense<0.000000e+00> : vector<1x32xf32>
    %23 = tpu.matmul %21, %22, %cst_16 {dimension_numbers = #tpu.dot_dimension_numbers<[1], [0], [0], [1], [0, 0, 1, 1], [], []>} : vector<1x4xf32>, vector<4x32xf32>, vector<1x32xf32> -> vector<1x32xf32>
    %24 = arith.negf %23 : vector<1x32xf32>
    %25 = math.exp %24 : vector<1x32xf32>
    %cst_17 = arith.constant 1.000000e+00 : f32
    %26 = vector.broadcast %cst_17 : f32 to vector<1x32xf32>
    %27 = arith.addf %26, %25 : vector<1x32xf32>
    %28 = arith.divf %26, %27 : vector<1x32xf32>
    %c0_18 = arith.constant 0 : index
    %c0_19 = arith.constant 0 : index
    %29 = memref.load %arg5[%c0_18, %c0_19] : memref<1x1xf32, #tpu.memory_space<smem>>
    %30 = vector.broadcast %29 : f32 to vector<1x32xf32>
    %31 = arith.mulf %30, %28 : vector<1x32xf32>
    %c0_20 = arith.constant 0 : index
    %c0_21 = arith.constant 0 : index
    %c0_22 = arith.constant 0 : index
    %32 = vector.load %arg1[%c0_20, %c0_21, %c0_22] : memref<1x32x256xf32, #tpu.memory_space<vmem>>, vector<1x32x256xf32>
    %33 = vector.shape_cast %31 : vector<1x32xf32> to vector<1x32x1xf32>
    %34 = vector.broadcast %33 : vector<1x32x1xf32> to vector<1x32x256xf32>
    %35 = arith.mulf %32, %34 : vector<1x32x256xf32>
    %c0_23 = arith.constant 0 : index
    %c0_24 = arith.constant 0 : index
    %c0_25 = arith.constant 0 : index
    %36 = vector.load %arg6[%c0_23, %c0_24, %c0_25] : memref<1x32x256xf32, #tpu.memory_space<vmem>>, vector<1x32x256xf32>
    tpu.vector_store %arg6[%c0_23, %c0_24, %c0_25], %35 {strides = array<i32>} : memref<1x32x256xf32, #tpu.memory_space<vmem>>, vector<1x32x256xf32>,
    return
  }
  func.func @transform_0(%arg0: i32) -> (i32, i32, i32) {
    %c0_i32 = arith.constant 0 : i32
    %c0_i32_0 = arith.constant 0 : i32
    %c0_i32_1 = arith.constant 0 : i32
    return %arg0, %c0_i32, %c0_i32_0 : i32, i32, i32
  }
  func.func @transform_1(%arg0: i32) -> (i32, i32) {
    %c0_i32 = arith.constant 0 : i32
    %c0_i32_0 = arith.constant 0 : i32
    %c0_i32_1 = arith.constant 0 : i32
    return %c0_i32, %c0_i32_0 : i32, i32
  }
  func.func @transform_2(%arg0: i32) -> (i32, i32) {
    %c0_i32 = arith.constant 0 : i32
    %c0_i32_0 = arith.constant 0 : i32
    %c0_i32_1 = arith.constant 0 : i32
    return %c0_i32, %c0_i32_0 : i32, i32
  }
  func.func @transform_3(%arg0: i32) -> (i32, i32) {
    %c0_i32 = arith.constant 0 : i32
    %c0_i32_0 = arith.constant 0 : i32
    %c0_i32_1 = arith.constant 0 : i32
    return %c0_i32, %c0_i32_0 : i32, i32
  }
  func.func @transform_4(%arg0: i32) -> (i32, i32) {
    %c0_i32 = arith.constant 0 : i32
    %c0_i32_0 = arith.constant 0 : i32
    %c0_i32_1 = arith.constant 0 : i32
    return %c0_i32, %c0_i32_0 : i32, i32
  }
  func.func @transform_5(%arg0: i32) -> (i32, i32, i32) {
    %c0_i32 = arith.constant 0 : i32
    %c0_i32_0 = arith.constant 0 : i32
    %c0_i32_1 = arith.constant 0 : i32
    return %arg0, %c0_i32, %c0_i32_0 : i32, i32, i32
  }
}

</mosaic_0001>

<bundles_post_ra>
// kernel: channel_attn.1
= control target key start
LH: loop header
LB: loop body
LE: loop exit
PB: predicated region body
PF: predicated region fallthrough
CT: control target
= control target key end

     0   :  { %s842_s20 = smov 0   ;;  %s979_s0 = inlined_call_operand.vmem [shape: f32[2,32,256], index: 0, kind: input, shape index: {}]   ;;  %s980_s1 = inlined_call_operand.vmem [shape: f32[32,4], index: 1, kind: input, shape index: {}]   ;;  %s981_s2 = inlined_call_operand.vmem [shape: f32[32,4], index: 2, kind: input, shape index: {}]   ;;  %s982_s3 = inlined_call_operand.vmem [shape: f32[4,32], index: 3, kind: input, shape index: {}]   ;;  %s983_s4 = inlined_call_operand.<no memory space> [shape: f32[1,1], index: 4, kind: input, shape index: {}]   ;;  %s984_s5 = inlined_call_operand.vmem [shape: f32[2,32,256], index: 5, kind: output, shape index: {}]  }
   0x1   :  { %10 = sst [smem:[#allocation2]] %s983_s4 }
   0x2 LB: > { %s705_s21 = sadd.s32 4294967295, %s804_s20   ;;  %p709_p0 = scmp.ge.s32.totalorder %s804_s20, 1  ;;  %s804_s20 = sphi %s842_s20, %s16_s20  }
   0x3   : > { %p188_p1 = scmp.lt.s32.totalorder %s804_s20, 3 }
   0x5   : > { %p189_p2 = pnand %p709_p0, %p188_p1 }
   0x6   : > { %p216_p3 = scmp.lt.s32.totalorder (!%p189_p2), %s705_s21, 1  ;;  %v319_v24 = vld [vmem:[%s980_s1] sm:$0xff] (!%p189_p2)  ;;  %v320_v25 = vld [vmem:[%s980_s1 + $0x8] sm:$0xff] (!%p189_p2)  ;;  %v806_v27 = vmov (!%p189_p2), 0.0|0.0   ;;  %v321_v28 = vld [vmem:[%s980_s1 + $0x10] sm:$0xff] (!%p189_p2)  ;;  %vm807_vm0 = vmmov (!%p189_p2), 0   ;;  %v331_v38 = vlaneseq (!%p189_p2) }
   0x7   : > { %192 = sbr.rel (%p189_p2) target bundleno = 784 (0x310), region = 40  ;;  %v769_v26 = vpack.c.bf16 (!%p189_p2), %v320_v25, %v319_v24  ;;  %768 = vmatprep.subr.bf16.mxu0 (!%p189_p2), %v806_v27  ;;  %762 = vmatprep.subr.bf16.mxu1 (!%p189_p2), %v806_v27  ;;  %v322_v29 = vld [vmem:[%s980_s1 + $0x18] sm:$0xff] (!%p189_p2)  ;;  %v808_v31 = vmov (!%p189_p2), 0.0   ;;  %v323_v32 = vld [vmem:[%s981_s2] sm:$0xff] (!%p189_p2)  ;;  %v324_v33 = vld [vmem:[%s981_s2 + $0x8] sm:$0xff] (!%p189_p2)  ;;  %vm342_vm1 = vcmask (!%p189_p2), 130112  }
   0x8   : > { %v772_v30 = vpack.c.bf16 (!%p189_p2), %v322_v29, %v321_v28  ;;  %754 = vmatprep.mubr.msk.f32.mxu0 (!%p189_p2), %vm807_vm0, %v808_v31  ;;  %743 = vmatprep.mubr.msk.f32.mxu1 (!%p189_p2), %vm807_vm0, %v808_v31  ;;  %v325_v34 = vld [vmem:[%s981_s2 + $0x10] sm:$0xff] (!%p189_p2)  ;;  %v763_v35 = vpack.c.bf16 (!%p189_p2), %v324_v33, %v323_v32  ;;  %v326_v36 = vld [vmem:[%s981_s2 + $0x18] sm:$0xff] (!%p189_p2)  ;;  %v332_v39 = vand.u32 (!%p189_p2), 127, %v331_v38  ;;  %v927_v40 = vshrl.u32 (!%p189_p2), %v331_v38, 7  ;;  %s612_s18 = sld [smem:[#allocation2]] (!%p189_p2) }
   0x9   : > { %770 = vmatpush3.bf16.msra.mxu0 (!%p189_p2), %v769_v26  ;;  %v766_v37 = vpack.c.bf16 (!%p189_p2), %v326_v36, %v325_v34  ;;  %vm349_vm2 = vcmask (!%p189_p2), 195712   ;;  %vm356_vm3 = vcmask (!%p189_p2), 261312   ;;  %vm358_vm4 = vcmask (!%p189_p2), 261120  }
   0xa   : > { %771 = vmatprep.subr.bf16.mxu0 (!%p189_p2), %v806_v27  ;;  %764 = vmatpush3.bf16.msra.mxu1 (!%p189_p2), %v763_v35  ;;  %v351_v42 = vadd.s32 (!%p189_p2), 4294967272, %v332_v39  ;;  %v337_v43 = vadd.s32 (!%p189_p2), 4294967288, %v332_v39  ;;  %v344_v44 = vadd.s32 (!%p189_p2), 4294967280, %v332_v39  ;;  %v930_v48 = vsub.s32 (!%p189_p2), %v332_v39, %v927_v40 }
   0xb   : > { %765 = vmatprep.subr.bf16.mxu1 (!%p189_p2), %v806_v27  ;;  %vm532_vm13 = vcmask (!%p189_p2), 1043456   ;;  %vm528_vm14 = vcmask (!%p189_p2), 31744  }
   0xc   : > { %v933_v49 = vsub.s32 (!%p189_p2), %v351_v42, %v927_v40  ;;  %v936_v51 = vsub.s32 (!%p189_p2), %v337_v43, %v927_v40  ;;  %v939_v53 = vsub.s32 (!%p189_p2), %v344_v44, %v927_v40 }
   0xd   : > { %773 = vmatpush3.bf16.msra.mxu0 (!%p189_p2), %v772_v30 }
   0xe   : > { %s986_s21 = smov (!%p216_p3, %s705_s21), 1  ;;  %767 = vmatpush3.bf16.msra.mxu1 %v766_v37 }
   0xf   : > { %s721_s4 = sshll.u32 %s986_s21, 6  ;;  %757 = vmatprep.subr.mxu1 %v808_v31 }
  0x10   : > { %s220_s24 = scalar_lea.vmem %s979_s0, %s721_s4  ;;  %s225_s23 = scalar_lea.vmem %s984_s5, %s721_s4 }
  0x11   : > { %v858_v0 = vld [vmem:[%s220_s24 + $0x20] sm:$0xff]  ;;  %v860_v1 = vld [vmem:[%s220_s24 + $0x28] sm:$0xff]  ;;  %v868_v5 = vld [vmem:[%s220_s24 + $0x30] sm:$0xff] }
  0x12   : > { %v862_v2 = vld [vmem:[%s220_s24] sm:$0xff]  ;;  %v240_v3 = vadd.f32 %v860_v1, %v858_v0  ;;  %v866_v4 = vld [vmem:[%s220_s24 + $0x8] sm:$0xff]  ;;  %v870_v6 = vld [vmem:[%s220_s24 + $0x38] sm:$0xff]  ;;  %v252_v17 = vmul.f32 %v868_v5, %v868_v5  ;;  %v250_v20 = vmul.f32 %v858_v0, %v858_v0  ;;  %v251_v21 = vmul.f32 %v860_v1, %v860_v1 }
  0x13   : > { %v234_v7 = vadd.f32 %v866_v4, %v862_v2  ;;  %v874_v8 = vld [vmem:[%s220_s24 + $0x10] sm:$0xff]  ;;  %v876_v9 = vld [vmem:[%s220_s24 + $0x18] sm:$0xff]  ;;  %v243_v10 = vadd.f32 %v870_v6, %v868_v5  ;;  %v246_v14 = vmul.f32 %v862_v2, %v862_v2  ;;  %v247_v15 = vmul.f32 %v866_v4, %v866_v4 }
  0x14   : > { %241 = vadd.xlane.f32.xlu1 %v240_v3  ;;  %v248_v11 = vmul.f32 %v874_v8, %v874_v8  ;;  %v249_v12 = vmul.f32 %v876_v9, %v876_v9  ;;  %v237_v13 = vadd.f32 %v876_v9, %v874_v8  ;;  %v253_v18 = vmul.f32 %v870_v6, %v870_v6 }
  0x15   : > { %235 = vadd.xlane.f32.xlu0 %v234_v7  ;;  %v254_v19 = vadd.f32 %v247_v15, %v246_v14  ;;  %v260_v23 = vadd.f32 %v251_v21, %v250_v20 }
  0x16   : > { %v257_v16 = vadd.f32 %v249_v12, %v248_v11  ;;  %v263_v22 = vadd.f32 %v253_v18, %v252_v17 }
  0x18   : > { %244 = vadd.xlane.f32.xlu1 %v243_v10 }
  0x19   : > { %238 = vadd.xlane.f32.xlu0 %v237_v13 }
  0x1c   : > { %258 = vadd.xlane.f32.xlu1 %v257_v16 }
  0x1d   : > { %255 = vadd.xlane.f32.xlu0 %v254_v19 }
  0x20   : > { %264 = vadd.xlane.f32.xlu1 %v263_v22 }
  0x21   : > { %261 = vadd.xlane.f32.xlu0 %v260_v23 }
  0xa1   : > { %v242_v41 = vpop.xlane.xlu1 %241 }
  0xa2   : > { %v236_v45 = vpop.xlane.xlu0 %235  ;;  %v268_v47 = vmul.f32 0.00390625, %v242_v41 }
  0xa3   : > { %v266_v46 = vmul.f32 0.00390625, %v236_v45 }
  0xa4   : > { %v272_v59 = vmul.f32 256.0, %v268_v47  ;;  %v447_v7 = vrot.slane %v268_v47, %v939_v53 }
  0xa5   : > { %v245_v50 = vpop.xlane.xlu1 %244  ;;  %v270_v52 = vmul.f32 256.0, %v266_v46  ;;  %v438_v57 = vrot.slane %v266_v46, %v930_v48 }
  0xa6   : > { %v269_v54 = vmul.f32 0.00390625, %v245_v50  ;;  %v239_v55 = vpop.xlane.xlu0 %238  ;;  %v276_v20 = vmul.f32 %v272_v59, %v268_v47 }
  0xa7   : > { %v267_v56 = vmul.f32 0.00390625, %v239_v55  ;;  %v274_v3 = vmul.f32 %v270_v52, %v266_v46 }
  0xa8   : > { %v273_v58 = vmul.f32 256.0, %v269_v54  ;;  %v452_v60 = vrot.slane %v269_v54, %v933_v49 }
  0xa9   : > { %v442_v61 = vrot.slane %v267_v56, %v936_v51  ;;  %v259_v62 = vpop.xlane.xlu1 %258  ;;  %v271_v63 = vmul.f32 256.0, %v267_v56 }
  0xaa   : > { %v256_v10 = vpop.xlane.xlu0 %255  ;;  %v277_v14 = vmul.f32 %v273_v58, %v269_v54 }
  0xab   : > { %v275_v11 = vmul.f32 %v271_v63, %v267_v56  ;;  %v278_v12 = vsub.f32 %v256_v10, %v274_v3  ;;  %v443_v13 = vsel %vm342_vm1, %v442_v61, %v438_v57 }
  0xac   : > { %v448_v15 = vsel %vm349_vm2, %v447_v7, %v443_v13 }
  0xad   : > { %v279_v16 = vsub.f32 %v259_v62, %v275_v11  ;;  %v283_v17 = vmul.f32 0.003921569, %v278_v12  ;;  %v265_v18 = vpop.xlane.xlu1 %264  ;;  %v453_v19 = vsel %vm356_vm3, %v452_v60, %v448_v15  ;;  %v613_v15 = vstv %s612_s18 }
  0xae   : > { %v281_v21 = vsub.f32 %v265_v18, %v277_v14  ;;  %755 = vmatmul.mubr.msk.f32.vlgmr.msra.gmra.mrb[0].mxu0 %vm358_vm4, %v453_v19  ;;  %v262_v22 = vpop.xlane.xlu0 %261 }
  0xaf   : > { %v284_v23 = vmul.f32 0.003921569, %v279_v16  ;;  %v287_v24 = vmax.f32 %v283_v17, 0.0  ;;  %v280_v25 = vsub.f32 %v262_v22, %v276_v20  ;;  %v617_v16 = vsub.s32 0, %v927_v40 }
  0xb0   : > { %v286_v26 = vmul.f32 0.003921569, %v281_v21 }
  0xb1   : > { %v288_v27 = vmax.f32 %v284_v23, 0.0  ;;  %786 = vrsqrt.f32 %v287_v24  ;;  %v285_v28 = vmul.f32 0.003921569, %v280_v25  ;;  %vm293_vm5 = vcmp.eq.f32.partialorder %v287_v24, inf }
  0xb2   : > { %v290_v29 = vmax.f32 %v286_v26, 0.0  ;;  %vm295_vm6 = vcmp.eq.f32.partialorder %v287_v24, 0.0  ;;  %v296_v35 = vand.u32 2147483648, %v287_v24 }
  0xb3   : > { %788 = vrsqrt.f32 %v288_v27  ;;  %v289_v30 = vmax.f32 %v285_v28, 0.0  ;;  %vm300_vm7 = vcmp.eq.f32.partialorder %v288_v27, inf  ;;  %vm302_vm8 = vcmp.eq.f32.partialorder %v288_v27, 0.0 }
  0xb4   : > { %790 = vrsqrt.f32 %v290_v29  ;;  %v303_v39 = vand.u32 2147483648, %v288_v27  ;;  %vm314_vm9 = vcmp.eq.f32.partialorder %v290_v29, inf  ;;  %vm316_vm10 = vcmp.eq.f32.partialorder %v290_v29, 0.0 }
  0xb5   : > { %792 = vrsqrt.f32 %v289_v30  ;;  %vm307_vm11 = vcmp.eq.f32.partialorder %v289_v30, inf  ;;  %v317_v46 = vand.u32 2147483648, %v290_v29  ;;  %vm309_vm12 = vcmp.eq.f32.partialorder %v289_v30, 0.0 }
  0xb6   : > { %v310_v50 = vand.u32 2147483648, %v289_v30 }
  0xbb   : > { %v787_v32 = vpop.eup %786 }
  0xbc   : > { %v292_v33 = vmul.f32 %v787_v32, %v287_v24 }
  0xbd   : > { %v789_v34 = vpop.eup %788 }
  0xbe   : > { %v791_v36 = vpop.eup %790  ;;  %v299_v37 = vmul.f32 %v789_v34, %v288_v27  ;;  %v294_v38 = vsel %vm293_vm5, %v287_v24, %v292_v33 }
  0xbf   : > { %v793_v41 = vpop.eup %792  ;;  %v297_v42 = vsel %vm295_vm6, %v296_v35, %v294_v38  ;;  %v313_v43 = vmul.f32 %v791_v36, %v290_v29 }
  0xc0   : > { %v301_v44 = vsel %vm300_vm7, %v288_v27, %v299_v37  ;;  %v306_v45 = vmul.f32 %v793_v41, %v289_v30  ;;  %v336_v56 = vrot.slane %v297_v42, %v930_v48  ;;  %v527_v48 = vld [vmem:[%s982_s3] sm:$0xf] }
  0xc1   : > { %v304_v47 = vsel %vm302_vm8, %v303_v39, %v301_v44  ;;  %v315_v52 = vsel %vm314_vm9, %v290_v29, %v313_v43 }
  0xc2   : > { %v308_v54 = vsel %vm307_vm11, %v289_v30, %v306_v45  ;;  %v318_v55 = vsel %vm316_vm10, %v317_v46, %v315_v52  ;;  %v341_v57 = vrot.slane %v304_v47, %v936_v51 }
  0xc3   : > { %v311_v58 = vsel %vm309_vm12, %v310_v50, %v308_v54  ;;  %v355_v59 = vrot.slane %v318_v55, %v933_v49 }
  0xc4   : > { %v343_v60 = vsel %vm342_vm1, %v341_v57, %v336_v56  ;;  %v348_v61 = vrot.slane %v311_v58, %v939_v53 }
  0xc6   : > { %v350_v62 = vsel %vm349_vm2, %v348_v61, %v343_v60 }
  0xc7   : > { %v357_v63 = vsel %vm356_vm3, %v355_v59, %v350_v62 }
  0xc8   : > { %744 = vmatmul.mubr.msk.f32.vlgmr.msra.gmra.mrb[0].mxu1 %vm358_vm4, %v357_v63 }
  0xc9   : > { %759 = vmatprep.mubr.msk.f32.mxu1 %vm807_vm0, %v808_v31  ;;  %758 = vmatpush3.msk.msra.mxu1 %vm532_vm13, %v527_v48 }
 0x181   : > { %v522_v49 = vpop.f32.mrb[0].mxu0 }
 0x182   : > { %v756_v51 = vpop.f32.mrb[1].mxu0 }
 0x19b   : > { %v427_v3 = vpop.f32.mrb[0].mxu1 }
 0x19c   : > { %v523_v7 = vadd.f32 %v522_v49, %v427_v3  ;;  %v745_v53 = vpop.f32.mrb[1].mxu1 }
 0x19e   : > { %v526_v10 = vmax.f32 %v523_v7, 0.0 }
 0x1a0   : > { %760 = vmatmul.mubr.msk.f32.vlgmr.msra.gmra.mrb[2].mxu1 %vm528_vm14, %v526_v10 }
 0x273   : > { %v602_v11 = vpop.f32.mrb[2].mxu1 }
 0x274   : > { %v718_v12 = vmul.f32 -1.442695, %v602_v11  ;;  %v761_v13 = vpop.f32.mrb[3].mxu1 }
 0x276   : > { %794 = vpow2.f32 %v718_v12 }
 0x280   : > { %v795_v31 = vpop.eup %794 }
 0x281   : > { %v609_v14 = vadd.f32 1.0, %v795_v31 }
 0x283   : > { %796 = vrcp.f32 %v609_v14 }
 0x28d   : > { %v797_v17 = vpop.eup %796 }
 0x28e   : > { %v614_v18 = vmul.f32 %v797_v17, %v613_v15 }
 0x290   : > { %v618_v19 = vrot.slane %v614_v18, %v617_v16 }
 0x292   : > { %624 = vbcast.lane.b32.xlu1 %v618_v19, 264  ;;  %620 = vbcast.lane.b32.xlu0 %v618_v19, 256 }
 0x296   : > { %628 = vbcast.lane.b32.xlu1 %v618_v19, 272 }
 0x29a   : > { %632 = vbcast.lane.b32.xlu1 %v618_v19, 280 }
 0x304   : > { %v625_v20 = vpop.permute.xlu1 %624  ;;  %v621_v21 = vpop.permute.xlu0 %620 }
 0x305   : > { %v636_v22 = vmul.f32 %v625_v20, %v874_v8  ;;  %v637_v23 = vmul.f32 %v625_v20, %v876_v9  ;;  %v634_v40 = vmul.f32 %v621_v21, %v862_v2  ;;  %v635_v24 = vmul.f32 %v621_v21, %v866_v4 }
 0x307   : > { %644 = vst [vmem:[%s225_s23 + $0x10] sm:$0xff] %v636_v22  ;;  %645 = vst [vmem:[%s225_s23 + $0x18] sm:$0xff] %v637_v23 }
 0x308   : > { %642 = vst [vmem:[%s225_s23] sm:$0xff] %v634_v40  ;;  %643 = vst [vmem:[%s225_s23 + $0x8] sm:$0xff] %v635_v24  ;;  %v629_v25 = vpop.permute.xlu1 %628 }
 0x309   : > { %v638_v26 = vmul.f32 %v629_v25, %v858_v0  ;;  %v639_v27 = vmul.f32 %v629_v25, %v860_v1 }
 0x30b   : > { %646 = vst [vmem:[%s225_s23 + $0x20] sm:$0xff] %v638_v26  ;;  %647 = vst [vmem:[%s225_s23 + $0x28] sm:$0xff] %v639_v27 }
 0x30c   : > { %v633_v28 = vpop.permute.xlu1 %632 }
 0x30d   : > { %v640_v8 = vmul.f32 %v633_v28, %v868_v5  ;;  %v641_v9 = vmul.f32 %v633_v28, %v870_v6 }
 0x30f   : > { %648 = vst [vmem:[%s225_s23 + $0x30] sm:$0xff] %v640_v8  ;;  %649 = vst [vmem:[%s225_s23 + $0x38] sm:$0xff] %v641_v9 }
 0x310 PF: > { %s16_s20 = sadd.s32 1, %s804_s20  }
 0x311   : > { %p13_p4 = scmp.ge.s32.totalorder %s16_s20, 4  }
 0x313   :  { %15 = sbr.rel (!%p13_p4) target bundleno = 2 (0x2), region = 70 }

</bundles_post_ra>
